<compile_context>
chip_gen: v6e
topology: v6e:2x2x1
jax: 0.10.0
libtpu: 0.0.40
codegen_flags: <defaults>
</compile_context>

<pallas_src>
import functools
import math

import jax
import jax.numpy as jnp
from jax import lax
from jax.experimental import pallas as pl
from jax.experimental.pallas import tpu as pltpu

NEG_INF = -1e30  # finite (not -inf) so fully-masked rows never produce inf-inf NaNs


def _pick_tile(dim, cap, align):
    """Largest `align`-aligned tile <= cap that evenly divides dim.

    Falls back to the full extent (always a legal block shape) when no aligned
    divisor exists.
    """
    if dim <= cap:
        return dim
    t = (cap // align) * align
    while t >= align:
        if dim % t == 0:
            return t
        t -= align
    # TODO(synk): pre-pad ragged/prime dims instead of full-extent fallback (VMEM risk for huge dims).
    return dim


# --------------------------------------------------------------------------- #
# Tiled matmul + bias: out = x @ w + b                                         #
# --------------------------------------------------------------------------- #
def _matmul_bias_kernel(x_ref, w_ref, b_ref, o_ref, acc_ref):
    @pl.when(pl.program_id(2) == 0)
    def _():
        acc_ref[...] = jnp.zeros_like(acc_ref)

    # MXU inputs stay in their native dtype; accumulate in f32.
    acc_ref[...] += jnp.dot(x_ref[...], w_ref[...],
                            preferred_element_type=jnp.float32)

    @pl.when(pl.program_id(2) == pl.num_programs(2) - 1)
    def _():
        o_ref[...] = (acc_ref[...] + b_ref[...].astype(jnp.float32)).astype(o_ref.dtype)


def _matmul_bias(x, w, b, *, tm_cap=256, tn_cap=512, tk_cap=512):
    M, K = x.shape
    K2, N = w.shape
    assert K == K2
    tm = _pick_tile(M, tm_cap, 8)     # second-to-last dims: multiples of 8
    tn = _pick_tile(N, tn_cap, 128)   # last dims: multiples of 128 (or full extent)
    tk = _pick_tile(K, tk_cap, 128)
    b2 = b.reshape(1, N)

    return pl.pallas_call(
        _matmul_bias_kernel,
        out_shape=jax.ShapeDtypeStruct((M, N), x.dtype),
        grid_spec=pltpu.PrefetchScalarGridSpec(
            num_scalar_prefetch=0,
            grid=(M // tm, N // tn, K // tk),
            in_specs=[
                pl.BlockSpec((tm, tk), lambda i, j, kk: (i, kk)),
                pl.BlockSpec((tk, tn), lambda i, j, kk: (kk, j)),
                pl.BlockSpec((1, tn), lambda i, j, kk: (0, j)),
            ],
            out_specs=pl.BlockSpec((tm, tn), lambda i, j, kk: (i, j)),
            scratch_shapes=[pltpu.VMEM((tm, tn), jnp.float32)],
        ),
        compiler_params=pltpu.CompilerParams(
            dimension_semantics=("parallel", "parallel", "arbitrary")),
    )(x, w, b2)


# --------------------------------------------------------------------------- #
# Flash attention (online softmax), shared kernel body.                       #
# Grid = (B, H, Tq tiles, Tk tiles); refs are 2-D (tq, D) / (tk, D).          #
# --------------------------------------------------------------------------- #
def _flash_kernel(q_ref, k_ref, v_ref, o_ref, m_sc, l_sc, acc_sc, *, causal):
    tq = q_ref.shape[0]
    tk = k_ref.shape[0]
    qi = pl.program_id(2)
    ki = pl.program_id(3)
    q_start = qi * tq
    kv_start = ki * tk

    @pl.when(ki == 0)
    def _():
        m_sc[...] = jnp.full(m_sc.shape, NEG_INF, dtype=m_sc.dtype)
        l_sc[...] = jnp.zeros_like(l_sc)
        acc_sc[...] = jnp.zeros_like(acc_sc)

    def _update(masked):
        q = q_ref[...]                         # (tq, D); softmax scale folded into W_q/b_q
        k = k_ref[...]                         # (tk, D)
        v = v_ref[...]                         # (tk, D)
        # Contract over D without materializing k.T (transpose folded into MXU operand).
        s = lax.dot_general(q, k, dimension_numbers=(((1,), (1,)), ((), ())),
                            preferred_element_type=jnp.float32)       # (tq, tk) f32
        if masked:
            row = q_start + lax.broadcasted_iota(jnp.int32, (tq, tk), 0)
            col = kv_start + lax.broadcasted_iota(jnp.int32, (tq, tk), 1)
            s = jnp.where(col <= row, s, NEG_INF)
        m_prev = m_sc[...]
        m_new = jnp.maximum(m_prev, jnp.max(s, axis=-1, keepdims=True))
        alpha = jnp.exp(m_prev - m_new)
        p = jnp.exp(s - m_new)
        l_sc[...] = alpha * l_sc[...] + jnp.sum(p, axis=-1, keepdims=True)
        acc_sc[...] = alpha * acc_sc[...] + jnp.dot(
            p.astype(v.dtype), v, preferred_element_type=jnp.float32)
        m_sc[...] = m_new

    if causal:
        visited = kv_start <= q_start + tq - 1      # not fully above the diagonal
        straddles = kv_start + tk - 1 > q_start     # block contains masked entries

        @pl.when(jnp.logical_and(visited, straddles))
        def _():
            _update(masked=True)

        @pl.when(jnp.logical_not(straddles))        # fully below diagonal => no mask math
        def _():
            _update(masked=False)
    else:
        _update(masked=False)

    @pl.when(ki == pl.num_programs(3) - 1)
    def _():
        o_ref[...] = (acc_sc[...] *
                      pl.reciprocal(l_sc[...], approx=True)).astype(o_ref.dtype)


def _flash_attention_fused(qkv, *, B, T, C, n_head, causal, tq_cap=128, tk_cap=256):
    """Reads q/k/v blocks straight out of the fused (M, 3C) QKV buffer and writes
    the merged-head output (M, C) directly (head split/merge fused via index_maps).
    Requires D % 128 == 0 and T % 8 == 0."""
    D = C // n_head
    M = B * T
    tq = _pick_tile(T, tq_cap, 8)
    tk = _pick_tile(T, tk_cap, 8)
    nq, nk = T // tq, T // tk

    def q_map(b, h, qi, ki):
        return (b * nq + qi, h)                 # rows b*T + qi*tq, cols h*D (Q heads)

    def kv_map(col_block_off):
        def _map(b, h, qi, ki):
            if causal:
                # Clamp so skipped upper-triangle steps reuse the previous block -> no DMA.
                ki = jnp.minimum(ki, (qi * tq + tq - 1) // tk)
            return (b * nk + ki, col_block_off + h)
        return _map

    kernel = functools.partial(_flash_kernel, causal=causal)
    return pl.pallas_call(
        kernel,
        out_shape=jax.ShapeDtypeStruct((M, C), qkv.dtype),
        grid_spec=pltpu.PrefetchScalarGridSpec(
            num_scalar_prefetch=0,
            grid=(B, n_head, nq, nk),
            in_specs=[
                pl.BlockSpec((tq, D), q_map),                 # Q   cols [h*D, (h+1)*D)
                pl.BlockSpec((tk, D), kv_map(n_head)),        # K   cols C + h*D
                pl.BlockSpec((tk, D), kv_map(2 * n_head)),    # V   cols 2C + h*D
            ],
            out_specs=pl.BlockSpec((tq, D), q_map),           # merged-head layout (M, C)
            scratch_shapes=[
                pltpu.VMEM((tq, 1), jnp.float32),             # running max m
                pltpu.VMEM((tq, 1), jnp.float32),             # running denom l
                pltpu.VMEM((tq, D), jnp.float32),             # output accumulator
            ],
        ),
        compiler_params=pltpu.CompilerParams(
            dimension_semantics=("parallel", "parallel", "parallel", "arbitrary")),
    )(qkv, qkv, qkv)


def _flash_attention_heads(qh, kh, vh, *, B, n_head, causal, tq_cap=128, tk_cap=256):
    """Fallback path (D not a multiple of 128): per-head (B*H, T, D) layout with
    block last dim == full D. Leading dim squeezed so the kernel sees 2-D refs."""
    BH, T, D = qh.shape
    tq = _pick_tile(T, tq_cap, 8)
    tk = _pick_tile(T, tk_cap, 8)
    nq, nk = T // tq, T // tk

    def q_map(b, h, qi, ki):
        return (b * n_head + h, qi, 0)

    def kv_map(b, h, qi, ki):
        if causal:
            ki = jnp.minimum(ki, (qi * tq + tq - 1) // tk)
        return (b * n_head + h, ki, 0)

    kernel = functools.partial(_flash_kernel, causal=causal)
    return pl.pallas_call(
        kernel,
        out_shape=jax.ShapeDtypeStruct((BH, T, D), qh.dtype),
        grid_spec=pltpu.PrefetchScalarGridSpec(
            num_scalar_prefetch=0,
            grid=(B, n_head, nq, nk),
            in_specs=[
                pl.BlockSpec((None, tq, D), q_map),
                pl.BlockSpec((None, tk, D), kv_map),
                pl.BlockSpec((None, tk, D), kv_map),
            ],
            out_specs=pl.BlockSpec((None, tq, D), q_map),
            scratch_shapes=[
                pltpu.VMEM((tq, 1), jnp.float32),
                pltpu.VMEM((tq, 1), jnp.float32),
                pltpu.VMEM((tq, D), jnp.float32),
            ],
        ),
        compiler_params=pltpu.CompilerParams(
            dimension_semantics=("parallel", "parallel", "parallel", "arbitrary")),
    )(qh, kh, vh)


# --------------------------------------------------------------------------- #
# Full module forward                                                          #
# --------------------------------------------------------------------------- #
def self_attention(x, w_attn, b_attn, w_proj, b_proj, *, n_head, causal):
    """x: (B, T, C); w_attn: (C, 3C); b_attn: (3C,); w_proj: (C, C); b_proj: (C,)."""
    B, T, C = x.shape
    assert C % n_head == 0
    D = C // n_head
    M = B * T
    sm_scale = 1.0 / math.sqrt(D)

    # Fold 1/sqrt(D) into the Q projection (one-time, removes a per-ki VPU scale).
    w_attn = w_attn.at[:, :C].multiply(sm_scale)
    b_attn = b_attn.at[:C].multiply(sm_scale)

    # --- fused QKV projection ---
    qkv = _matmul_bias(x.reshape(M, C), w_attn, b_attn)        # (M, 3C)

    # --- scaled dot product attention (flash-style) ---
    # TODO(synk): attention dropout omitted (module evaluated with training=False -> p=0).
    if (D % 128 == 0) and (T % 8 == 0):
        # Head split/merge fused into the kernel's BlockSpec index_maps.
        y = _flash_attention_fused(qkv, B=B, T=T, C=C, n_head=n_head, causal=causal)   # (M, C)
    else:
        # Fallback for small / non-lane-aligned head dims.
        q, k, v = qkv[:, :C], qkv[:, C:2 * C], qkv[:, 2 * C:]

        def to_heads(t):
            return t.reshape(B, T, n_head, D).transpose(0, 2, 1, 3).reshape(B * n_head, T, D)

        yh = _flash_attention_heads(to_heads(q), to_heads(k), to_heads(v),
                                    B=B, n_head=n_head, causal=causal)
        y = yh.reshape(B, n_head, T, D).transpose(0, 2, 1, 3).reshape(M, C)

    # --- output projection ---
    # TODO(synk): residual dropout omitted (eval mode, p=0).
    out = _matmul_bias(y, w_proj, b_proj)                      # (M, C)
    return out.reshape(B, T, C)


def _reference(x, w_attn, b_attn, w_proj, b_proj, n_head, causal):
    """Pure-JAX reference mirroring the PyTorch forward (dropout=0)."""
    B, T, C = x.shape
    D = C // n_head
    qkv = x @ w_attn + b_attn                                  # (B, T, 3C)
    q, k, v = jnp.split(qkv, 3, axis=-1)

    def to_heads(t):
        return t.reshape(B, T, n_head, D).transpose(0, 2, 1, 3)  # (B, H, T, D)

    q, k, v = to_heads(q), to_heads(k), to_heads(v)
    s = jnp.einsum('bhtd,bhsd->bhts', q, k) / math.sqrt(D)
    if causal:
        mask = jnp.tril(jnp.ones((T, T), dtype=bool))
        s = jnp.where(mask[None, None], s, -jnp.inf)
    p = jax.nn.softmax(s, axis=-1)
    y = jnp.einsum('bhts,bhsd->bhtd', p, v)
    y = y.transpose(0, 2, 1, 3).reshape(B, T, C)
    return y @ w_proj + b_proj


def _run_case(B, T, C, n_head, causal, seed):
    key = jax.random.PRNGKey(seed)
    kx, kw1, kb1, kw2, kb2 = jax.random.split(key, 5)
    x = jax.random.normal(kx, (B, T, C), dtype=jnp.float32)
    # deterministic synthetic parameters (nn.Linear(dim, 3*dim), nn.Linear(dim, dim), bias=True)
    w_attn = 0.02 * jax.random.normal(kw1, (C, 3 * C), dtype=jnp.float32)
    b_attn = 0.02 * jax.random.normal(kb1, (3 * C,), dtype=jnp.float32)
    w_proj = 0.02 * jax.random.normal(kw2, (C, C), dtype=jnp.float32)
    b_proj = 0.02 * jax.random.normal(kb2, (C,), dtype=jnp.float32)

    out = self_attention(x, w_attn, b_attn, w_proj, b_proj,
                         n_head=n_head, causal=causal)
    out = jax.block_until_ready(out)

    ref = _reference(x, w_attn, b_attn, w_proj, b_proj, n_head, causal)
    assert out.shape == (B, T, C)
    assert jnp.allclose(out, ref, atol=2e-3, rtol=2e-3), \
        f"mismatch vs reference for B={B} T={T} C={C} H={n_head} causal={causal}"


if __name__ == "__main__":
    # Main config: head_dim = 128 -> exercises the fused (lane-dense) attention path.
    _run_case(B=2, T=16, C=256, n_head=2, causal=True, seed=0)
    # Small config: head_dim = 8 -> exercises the per-head fallback path.
    _run_case(B=2, T=8, C=32, n_head=4, causal=True, seed=0)
    print("KERNEL_OK")
</pallas_src>

<mosaic_0001>
module attributes {stable_mosaic.version = 11 : i64} {
  func.func @_matmul_bias_kernel(%arg0: i32, %arg1: i32, %arg2: i32, %arg3: memref<32x256xf32, #tpu.memory_space<vmem>>, %arg4: memref<256x384xf32, #tpu.memory_space<vmem>>, %arg5: memref<1x384xf32, #tpu.memory_space<vmem>>, %arg6: memref<32x384xf32, #tpu.memory_space<vmem>>, %arg7: memref<32x384xf32, #tpu.memory_space<vmem>>) attributes {dimension_semantics = [#tpu.dimension_semantics<parallel>, #tpu.dimension_semantics<parallel>, #tpu.dimension_semantics<arbitrary>], iteration_bounds = array<i64: 1, 2, 1>, scalar_prefetch = 0 : i64, scratch_operands = 1 : i64, tpu.core_type = #tpu.core_type<tc>, window_params = [{transform_indices = @transform_0, window_bounds = array<i64: 32, 256>}, {transform_indices = @transform_1, window_bounds = array<i64: 256, 384>}, {transform_indices = @transform_2, window_bounds = array<i64: 1, 384>}, {transform_indices = @transform_3, window_bounds = array<i64: 32, 384>}]} {
    %c0_i32 = arith.constant 0 : i32
    %0 = arith.cmpi eq, %arg2, %c0_i32 : i32
    %1 = arith.extui %0 : i1 to i32
    %c0_i32_0 = arith.constant 0 : i32
    %2 = arith.cmpi ne, %1, %c0_i32_0 : i32
    scf.if %2 {
      %cst_10 = arith.constant 0.000000e+00 : f32
      %12 = vector.broadcast %cst_10 : f32 to vector<32x384xf32>
      %c0_11 = arith.constant 0 : index
      %c0_12 = arith.constant 0 : index
      %13 = vector.load %arg7[%c0_11, %c0_12] : memref<32x384xf32, #tpu.memory_space<vmem>>, vector<32x384xf32>
      tpu.vector_store %arg7[%c0_11, %c0_12], %12 {strides = array<i32>} : memref<32x384xf32, #tpu.memory_space<vmem>>, vector<32x384xf32>,
    } else {
    }
    %c0 = arith.constant 0 : index
    %c0_1 = arith.constant 0 : index
    %3 = vector.load %arg7[%c0, %c0_1] : memref<32x384xf32, #tpu.memory_space<vmem>>, vector<32x384xf32>
    %c0_2 = arith.constant 0 : index
    %c0_3 = arith.constant 0 : index
    %4 = vector.load %arg3[%c0_2, %c0_3] : memref<32x256xf32, #tpu.memory_space<vmem>>, vector<32x256xf32>
    %c0_4 = arith.constant 0 : index
    %c0_5 = arith.constant 0 : index
    %5 = vector.load %arg4[%c0_4, %c0_5] : memref<256x384xf32, #tpu.memory_space<vmem>>, vector<256x384xf32>
    %cst = arith.constant dense<0.000000e+00> : vector<32x384xf32>
    %6 = tpu.matmul %4, %5, %cst {dimension_numbers = #tpu.dot_dimension_numbers<[1], [0], [0], [1], [0, 0, 1, 1], [], []>} : vector<32x256xf32>, vector<256x384xf32>, vector<32x384xf32> -> vector<32x384xf32>
    %7 = arith.addf %3, %6 : vector<32x384xf32>
    %c0_6 = arith.constant 0 : index
    %c0_7 = arith.constant 0 : index
    %8 = vector.load %arg7[%c0_6, %c0_7] : memref<32x384xf32, #tpu.memory_space<vmem>>, vector<32x384xf32>
    tpu.vector_store %arg7[%c0_6, %c0_7], %7 {strides = array<i32>} : memref<32x384xf32, #tpu.memory_space<vmem>>, vector<32x384xf32>,
    %c0_i32_8 = arith.constant 0 : i32
    %9 = arith.cmpi eq, %arg2, %c0_i32_8 : i32
    %10 = arith.extui %9 : i1 to i32
    %c0_i32_9 = arith.constant 0 : i32
    %11 = arith.cmpi ne, %10, %c0_i32_9 : i32
    scf.if %11 {
      %c0_10 = arith.constant 0 : index
      %c0_11 = arith.constant 0 : index
      %12 = vector.load %arg7[%c0_10, %c0_11] : memref<32x384xf32, #tpu.memory_space<vmem>>, vector<32x384xf32>
      %c0_12 = arith.constant 0 : index
      %c0_13 = arith.constant 0 : index
      %13 = vector.load %arg5[%c0_12, %c0_13] : memref<1x384xf32, #tpu.memory_space<vmem>>, vector<1x384xf32>
      %14 = vector.broadcast %13 : vector<1x384xf32> to vector<32x384xf32>
      %15 = arith.addf %12, %14 : vector<32x384xf32>
      %c0_14 = arith.constant 0 : index
      %c0_15 = arith.constant 0 : index
      %16 = vector.load %arg6[%c0_14, %c0_15] : memref<32x384xf32, #tpu.memory_space<vmem>>, vector<32x384xf32>
      tpu.vector_store %arg6[%c0_14, %c0_15], %15 {strides = array<i32>} : memref<32x384xf32, #tpu.memory_space<vmem>>, vector<32x384xf32>,
    } else {
    }
    return
  }
  func.func @transform_0(%arg0: i32, %arg1: i32, %arg2: i32) -> (i32, i32) {
    %c0_i32 = arith.constant 0 : i32
    return %arg0, %arg2 : i32, i32
  }
  func.func @transform_1(%arg0: i32, %arg1: i32, %arg2: i32) -> (i32, i32) {
    %c0_i32 = arith.constant 0 : i32
    return %arg2, %arg1 : i32, i32
  }
  func.func @transform_2(%arg0: i32, %arg1: i32, %arg2: i32) -> (i32, i32) {
    %c0_i32 = arith.constant 0 : i32
    %c0_i32_0 = arith.constant 0 : i32
    return %c0_i32, %arg1 : i32, i32
  }
  func.func @transform_3(%arg0: i32, %arg1: i32, %arg2: i32) -> (i32, i32) {
    %c0_i32 = arith.constant 0 : i32
    return %arg0, %arg1 : i32, i32
  }
}

</mosaic_0001>

<bundles_post_ra>
// kernel: tpu_custom_call.1
= control target key start
LH: loop header
LB: loop body
LE: loop exit
PB: predicated region body
PF: predicated region fallthrough
CT: control target
= control target key end

     0   :  { %8 = vsyncpa [#allocation4], 0  ;;  %s1479_s0 = inlined_call_operand.hbm [shape: f32[32,256], index: 0, kind: input, shape index: {}]   ;;  %s1480_s1 = inlined_call_operand.hbm [shape: f32[256,768], index: 1, kind: input, shape index: {}]   ;;  %s1481_s2 = inlined_call_operand.hbm [shape: f32[1,768], index: 2, kind: input, shape index: {}]   ;;  %s1482_s3 = inlined_call_operand.hbm [shape: f32[32,768], index: 3, kind: output, shape index: {}]  }
   0x1   :  { %9 = vsyncpa [#allocation7], 0 }
   0x2   :  { %11 = vsyncpa [#allocation7 + $0x1], 0 }
   0x3   :  { %12 = vsyncpa [#allocation5], 0 }
   0x4   :  { %14 = vsyncpa [#allocation5 + $0x1], 0  ;;  %s1165_s12 = smov 0   ;;  %s1167_s13 = smov 0  }
   0x5   :  { %s1169_s14 = smov 0   ;;  %s1171_s15 = smov 0  }
   0x6   :  { %s1173_s16 = smov 0   ;;  %s1175_s17 = smov 0  }
   0x7 LB: > { %s35_s18 = sadd.s32 1, %s1127_s16  ;;  %s76_s19 = sadd.s32 1, %s1119_s14  ;;  %s1131_s17 = sphi %s1175_s17, %s20_s17   ;;  %s1127_s16 = sphi %s1173_s16, %s1502_s16   ;;  %s1123_s15 = sphi %s1171_s15, %s1501_s15   ;;  %s1119_s14 = sphi %s1169_s14, %s1500_s14   ;;  %s1115_s13 = sphi %s1167_s13, %s1499_s13   ;;  %s1111_s12 = sphi %s1165_s12, %s1498_s12  }
   0x8   : > { %p37_p0 = scmp.ge.s32.totalorder %s35_s18, 2  ;;  %p83_p1 = scmp.ne.s32.totalorder %s1119_s14, %s1115_s13 }
   0x9   : > { %p84_p2 = scmp.eq.s32.totalorder %s1131_s17, 0  ;;  %p905_p5 = scmp.lt.s32.totalorder %s1131_s17, 2 }
   0xa   : > { %s1504_s18 = smov (%p37_p0, %s35_s18), 0  ;;  %s186_s21 = sand.u32 1, %s1131_s17  }
   0xb   : > { %p85_p4 = por %p84_p2, %p83_p1  ;;  %s72_s20 = ssub.s32 %s1127_s16, %s1504_s18 }
   0xc   : > { %p74_p6 = scmp.eq.s32.totalorder %s72_s20, 0  ;;  %s188_s22 = sand.u32 1, %s1119_s14  }
   0xd   : > { %s827_s23 = smul.u32 384, %s1127_s16  ;;  %p1220_p7 = pnand %p905_p5, %p85_p4 }
   0xe   : > { %s1213_s24 = scalar_select %p74_p6, %s1119_s14, %s76_s19  }
   0xf   : > { %s874_s25 = smul.u32 768, %s188_s22  ;;  %s199_s28 = scalar_lea.hbm %s1480_s1, %s827_s23 }
  0x10   : > { %s1224_s5 = scalar_lea.sflag [#allocation7], %s186_s21  ;;  %p1484_p8 = pneg %p1220_p7 }
  0x11   : > { %s190_s30 = scalar_lea.vmem [#allocation6], %s874_s25  ;;  %s1133_s7 = smov [#allocation6]  }
  0x12   : > { %s200_s4 = sshll.u32 %s190_s30, 4  ;;  %s983_s8 = sshll.u32 %s1133_s7, 4  ;;  %s201_s4 = int_to_ptr.vmem [resolvable:$true] %s200_s4  ;;  %s984_s8 = int_to_ptr.vmem [resolvable:$false] %s983_s8 }
  0x13   : > { %s978_s6 = scalar_lea.vmem %s201_s4, 12288  ;;  %s985_s9 = scalar_lea.vmem %s984_s8, 24576 }
  0x14   : > { %p979_p9 = scmp.ne.s32.totalorder %s201_s4, %s978_s6  ;;  %p986_p12 = scmp.lt.s32.totalorder %s201_s4, %s984_s8 }
  0x15   : > { %p987_p13 = scmp.lt.s32.totalorder %s985_s9, %s978_s6 }
  0x16   : > { %p981_p10 = pnand %p979_p9, %p1484_p8 }
  0x17   : > { %p988_p0 = por %p987_p13, %p986_p12 }
  0x18   : > { %p982_p11 = pneg %p981_p10 }
  0x1a   : > { %p989_p2 = pnand %p988_p0, %p982_p11 }
  0x1c   : > { %992 = shalt.err (!%p989_p2)
}
  0x1d   : > { %s1134_s10 = smov 768   ;;  %s1135_s11 = smov 384  }
  0x1e   : > { %s1136_s19 = smov 24   ;;  %s1235_s20 = sadd.s32 4294967295, %s1131_s17  }
  0x1f   : > { %896 = dma.hbm_to_vmem [thread:$0]  (!%p1220_p7), %s199_s28, 12288, %s201_s4, %s1224_s5, %s1134_s10, %s1135_s11, %s1136_s19  }
  0x20   : > { %s816_s21 = sadd.s32 4294967294, %s1131_s17   ;;  %p89_p4 = scmp.ne.s32.totalorder %s1115_s13, %s1111_s12 }
  0x21   : > { %p1483_p5 = scmp.eq.s32.totalorder %s1235_s20, 0  ;;  %p141_p6 = scmp.eq.s32.totalorder %s1235_s20, 1 }
  0x22   : > { %p147_p9 = scmp.eq.s32.totalorder %s816_s21, 1  ;;  %p817_p11 = scmp.ge.s32.totalorder %s1131_s17, 1 }
  0x23   : > { %p1244_p10 = por %p1483_p5, %p89_p4  ;;  %p1252_p12 = por %p141_p6, %p83_p1 }
  0x24   : > { %p1256_p13 = por %p147_p9, %p89_p4  ;;  %p154_p0 = scmp.lt.s32.totalorder %s1131_s17, 3 }
  0x25   : > { %s1488_s25 = scalar_select %p1252_p12, 1, 0 }
  0x26   : > { %s1489_s26 = scalar_select %p1256_p13, 1, 0 }
  0x27   : > { %p1261_p2 = pnand %p817_p11, %p154_p0  ;;  %s1137_s28 = smov [#allocation3]  }
  0x28   : > { %s172_s30 = sshll.u32 %s1137_s28, 4  ;;  %s875_s4 = smul.u32 3, %s188_s22  ;;  %s173_s30 = int_to_ptr.vmem [resolvable:$true] %s172_s30 }
  0x29   : > { %p889_p3 = pneg %p1261_p2  ;;  %s828_s6 = smul.u32 48, %s1127_s16 }
  0x2a   : > { %s214_s11 = scalar_lea.vmem [#allocation8], %s875_s4  ;;  %s1004_s21 = scalar_lea.vmem %s173_s30, 1024 }
  0x2b   : > { %p1272_p1 = pnand %p889_p3, %p1483_p5  ;;  %s1279_s10 = scalar_lea.hbm %s1481_s2, %s828_s6 }
  0x2c   : > { %s222_s19 = sshll.u32 %s214_s11, 4  ;;  %p1005_p6 = scmp.ne.s32.totalorder %s173_s30, %s1004_s21  ;;  %s223_s19 = int_to_ptr.vmem [resolvable:$true] %s222_s19 }
  0x2d   : > { %p995_p4 = pneg %p1272_p1  ;;  %p1012_p0 = scmp.lt.s32.totalorder %s173_s30, %s173_s30 }
  0x2e   : > { %p1013_p3 = scmp.lt.s32.totalorder %s1004_s21, %s1004_s21 }
  0x2f   : > { %p1007_p9 = pnand %p1005_p6, %p995_p4 }
  0x30   : > { %p1014_p5 = por %p1013_p3, %p1012_p0 }
  0x31   : > { %p1008_p11 = pneg %p1007_p9 }
  0x33   : > { %p1015_p8 = pnand %p1014_p5, %p1008_p11 }
  0x35   : > { %1018 = shalt.err (!%p1015_p8)
}
  0x36   : > { %s1138_s22 = smov 256   ;;  %s1139_s28 = smov 16  }
  0x37   : > { %892 = dma.hbm_to_vmem [thread:$0]  (!%p1272_p1), %s1479_s0, 1024, %s173_s30, [#allocation4], %s1138_s22, %s1138_s22, %s1139_s28  }
  0x38   : > { %s1032_s8 = scalar_lea.vmem %s223_s19, 48  ;;  %p1492_p12 = pneg %p1220_p7 }
  0x39   : > { %p1033_p13 = scmp.ne.s32.totalorder %s223_s19, %s1032_s8  ;;  %s1140_s9 = smov [#allocation8]  }
  0x3a   : > { %s1037_s11 = sshll.u32 %s1140_s9, 4  ;;  %s1038_s11 = int_to_ptr.vmem [resolvable:$false] %s1037_s11 }
  0x3b   : > { %p1035_p4 = pnand %p1033_p13, %p1492_p12  ;;  %s1039_s21 = scalar_lea.vmem %s1038_s11, 96 }
  0x3c   : > { %p1040_p8 = scmp.lt.s32.totalorder %s223_s19, %s1038_s11  ;;  %p1041_p5 = scmp.lt.s32.totalorder %s1039_s21, %s1032_s8 }
  0x3d   : > { %p1036_p6 = pneg %p1035_p4 }
  0x3e   : > { %p1042_p9 = por %p1041_p5, %p1040_p8 }
  0x40   : > { %p1043_p11 = pnand %p1042_p9, %p1036_p6 }
  0x42   : > { %1046 = shalt.err (!%p1043_p11)
}
  0x43   : > { %899 = dma.hbm_to_vmem [thread:$0]  (!%p1220_p7), %s1279_s10, 48, %s223_s19, %s1224_s5  }
  0x44   : > { %231 = sbr.rel (%p1261_p2) target bundleno = 368 (0x170), region = 32  ;;  %p1493_p12 = scmp.eq.s32.totalorder (!%p1261_p2), %s1235_s20, 0 }
  0x49   : > { %1098 = dma.done.wait (%p1493_p12), [#allocation4], 1024   ;;  %p1494_p13 = pmov %p1493_p12 }
  0x4a   : > { %s237_s30 = sand.u32 1, %s1235_s20   ;;  %s1303_s7 = sand.u32 1, %s1115_s13  }
  0x4b   : > { %1100 = vsyncadd (%p1494_p13), [#allocation4], 4294966272  ;;  %s876_s29 = smul.u32 768, %s1303_s7  ;;  %s238_s22 = scalar_lea.sflag [#allocation7], %s237_s30 }
  0x4d   : > { %s1306_s28 = scalar_lea.vmem [#allocation6], %s876_s29 }
  0x4e   : > { %1102 = dma.done.wait (%p1244_p10), %s238_s22, 12336  }
  0x4f   : > { %1104 = vsyncadd (%p1244_p10), %s238_s22, 4294954960  ;;  %v367_v0 = vld [vmem:[%s1306_s28 + $0x170] sm:$0xff]  ;;  %v366_v1 = vld [vmem:[%s1306_s28 + $0x168] sm:$0xff]  ;;  %s877_s5 = smul.u32 3, %s1303_s7  ;;  %p1495_p10 = scmp.ne.s32.totalorder %s1488_s25, 0 }
  0x50   : > { %v364_v2 = vld [vmem:[%s1306_s28 + $0x158] sm:$0xff]  ;;  %417 = vmatprep.subr.mxu0 %v367_v0  ;;  %v363_v3 = vld [vmem:[%s1306_s28 + $0x150] sm:$0xff]  ;;  %v361_v4 = vld [vmem:[%s1306_s28 + $0x140] sm:$0xff]  ;;  %s878_s23 = smul.u32 96, %s1303_s7  ;;  %s1141_s11 = smov [#allocation9]  }
  0x51   : > { %418 = vmatpush1.msra.mxu0 %v366_v1  ;;  %v360_v5 = vld [vmem:[%s1306_s28 + $0x138] sm:$0xff]  ;;  %v358_v6 = vld [vmem:[%s1306_s28 + $0x128] sm:$0xff]  ;;  %v357_v7 = vld [vmem:[%s1306_s28 + $0x120] sm:$0xff]  ;;  %s250_s20 = scalar_lea.vmem [#allocation8], %s877_s5  ;;  %s829_s10 = smul.u32 384, %s1123_s15 }
  0x52   : > { %419 = vmatprep.subr.mxu0 %v364_v2  ;;  %v355_v8 = vld [vmem:[%s1306_s28 + $0x110] sm:$0xff]  ;;  %v354_v9 = vld [vmem:[%s1306_s28 + $0x108] sm:$0xff]  ;;  %v352_v10 = vld [vmem:[%s1306_s28 + $0xf8] sm:$0xff]  ;;  %s1410_s27 = scalar_lea.vmem [#allocation9], %s878_s23  ;;  %s672_s15 = scalar_lea.sflag [#allocation5], %s1303_s7 }
  0x53   : > { %420 = vmatpush1.msra.mxu0 %v363_v3  ;;  %v351_v11 = vld [vmem:[%s1306_s28 + $0xf0] sm:$0xff]  ;;  %v416_v12 = vld [vmem:[%s1306_s28 + $0x2f8] sm:$0xff]  ;;  %v349_v13 = vld [vmem:[%s1306_s28 + $0xe0] sm:$0xff]  ;;  %s688_s19 = sshll.u32 %s1410_s27, 4  ;;  %s1427_s8 = scalar_lea.hbm %s1482_s3, %s829_s10  ;;  %s1429_s19 = int_to_ptr.vmem [resolvable:$true] %s688_s19 }
  0x54   : > { %421 = vmatprep.subr.mxu0 %v361_v4  ;;  %830 = vmatprep.subr.mxu1 %v416_v12  ;;  %v368_v14 = vld [vmem:[%s1306_s28 + $0x178] sm:$0xff]  ;;  %v413_v16 = vld [vmem:[%s1306_s28 + $0x2e0] sm:$0xff]  ;;  %v346_v18 = vld [vmem:[%s1306_s28 + $0xc8] sm:$0xff]  ;;  %s1047_s9 = scalar_lea.vmem %s1429_s19, 1536  ;;  %s1051_s21 = sshll.u32 %s1141_s11, 4  ;;  %s1052_s21 = int_to_ptr.vmem [resolvable:$false] %s1051_s21 }
  0x55   : > { %422 = vmatpush1.msra.mxu0 %v360_v5  ;;  %v348_v15 = vld [vmem:[%s1306_s28 + $0xd8] sm:$0xff]  ;;  %831 = vmatpush3.msra.mxu1 %v368_v14  ;;  %v365_v17 = vld [vmem:[%s1306_s28 + $0x160] sm:$0xff]  ;;  %v410_v19 = vld [vmem:[%s1306_s28 + $0x2c8] sm:$0xff]  ;;  %p1048_p7 = scmp.ne.s32.totalorder %s1429_s19, %s1047_s9  ;;  %s1053_s30 = scalar_lea.vmem %s1052_s21, 3072 }
  0x56   : > { %423 = vmatprep.subr.mxu0 %v358_v6  ;;  %832 = vmatprep.subr.mxu1 %v413_v16  ;;  %v345_v20 = vld [vmem:[%s1306_s28 + $0xc0] sm:$0xff]  ;;  %v362_v21 = vld [vmem:[%s1306_s28 + $0x148] sm:$0xff]  ;;  %v407_v22 = vld [vmem:[%s1306_s28 + $0x2b0] sm:$0xff]  ;;  %p1054_p0 = scmp.lt.s32.totalorder %s1429_s19, %s1052_s21  ;;  %p1055_p3 = scmp.lt.s32.totalorder %s1053_s30, %s1047_s9 }
  0x57   : > { %424 = vmatpush1.msra.mxu0 %v357_v7  ;;  %833 = vmatpush3.msra.mxu1 %v365_v17  ;;  %v343_v23 = vld [vmem:[%s1306_s28 + $0xb0] sm:$0xff]  ;;  %v342_v25 = vld [vmem:[%s1306_s28 + $0xa8] sm:$0xff]  ;;  %v404_v26 = vld [vmem:[%s1306_s28 + $0x298] sm:$0xff]  ;;  %p1049_p2 = pnand %p1048_p7, %p1495_p10 }
  0x58   : > { %425 = vmatprep.subr.mxu0 %v355_v8  ;;  %834 = vmatprep.subr.mxu1 %v410_v19  ;;  %v359_v24 = vld [vmem:[%s1306_s28 + $0x130] sm:$0xff]  ;;  %v340_v27 = vld [vmem:[%s1306_s28 + $0x98] sm:$0xff]  ;;  %v401_v30 = vld [vmem:[%s1306_s28 + $0x280] sm:$0xff]  ;;  %p1056_p4 = por %p1055_p3, %p1054_p0 }
  0x59   : > { %426 = vmatpush1.msra.mxu0 %v354_v9  ;;  %835 = vmatpush3.msra.mxu1 %v362_v21  ;;  %v356_v28 = vld [vmem:[%s1306_s28 + $0x118] sm:$0xff]  ;;  %v339_v29 = vld [vmem:[%s1306_s28 + $0x90] sm:$0xff]  ;;  %v337_v31 = vld [vmem:[%s1306_s28 + $0x80] sm:$0xff]  ;;  %p1050_p1 = pneg %p1049_p2 }
  0x5a   : > { %427 = vmatprep.subr.mxu0 %v352_v10  ;;  %836 = vmatprep.subr.mxu1 %v407_v22  ;;  %v353_v32 = vld [vmem:[%s1306_s28 + $0x100] sm:$0xff]  ;;  %v336_v33 = vld [vmem:[%s1306_s28 + $0x78] sm:$0xff]  ;;  %v398_v34 = vld [vmem:[%s1306_s28 + $0x268] sm:$0xff] }
  0x5b   : > { %428 = vmatpush1.msra.mxu0 %v351_v11  ;;  %837 = vmatpush3.msra.mxu1 %v359_v24  ;;  %v334_v35 = vld [vmem:[%s1306_s28 + $0x68] sm:$0xff]  ;;  %v333_v37 = vld [vmem:[%s1306_s28 + $0x60] sm:$0xff]  ;;  %v395_v38 = vld [vmem:[%s1306_s28 + $0x250] sm:$0xff]  ;;  %p1057_p6 = pnand %p1056_p4, %p1050_p1 }
  0x5c   : > { %429 = vmatprep.subr.mxu0 %v349_v13  ;;  %838 = vmatprep.subr.mxu1 %v404_v26  ;;  %v350_v36 = vld [vmem:[%s1306_s28 + $0xe8] sm:$0xff]  ;;  %v331_v39 = vld [vmem:[%s1306_s28 + $0x50] sm:$0xff]  ;;  %v392_v42 = vld [vmem:[%s1306_s28 + $0x238] sm:$0xff] }
  0x5d   : > { %430 = vmatpush1.msra.mxu0 %v348_v15  ;;  %839 = vmatpush3.msra.mxu1 %v356_v28  ;;  %v347_v40 = vld [vmem:[%s1306_s28 + $0xd0] sm:$0xff]  ;;  %v330_v41 = vld [vmem:[%s1306_s28 + $0x48] sm:$0xff]  ;;  %v328_v43 = vld [vmem:[%s1306_s28 + $0x38] sm:$0xff] }
  0x5e   : > { %431 = vmatprep.subr.mxu0 %v346_v18  ;;  %840 = vmatprep.subr.mxu1 %v401_v30  ;;  %v344_v44 = vld [vmem:[%s1306_s28 + $0xb8] sm:$0xff]  ;;  %v327_v45 = vld [vmem:[%s1306_s28 + $0x30] sm:$0xff]  ;;  %v389_v46 = vld [vmem:[%s1306_s28 + $0x220] sm:$0xff] }
  0x5f   : > { %432 = vmatpush1.msra.mxu0 %v345_v20  ;;  %841 = vmatpush3.msra.mxu1 %v353_v32  ;;  %v325_v47 = vld [vmem:[%s1306_s28 + $0x20] sm:$0xff]  ;;  %v324_v49 = vld [vmem:[%s1306_s28 + $0x18] sm:$0xff]  ;;  %v386_v50 = vld [vmem:[%s1306_s28 + $0x208] sm:$0xff] }
  0x60   : > { %433 = vmatprep.subr.mxu0 %v343_v23  ;;  %842 = vmatprep.subr.mxu1 %v398_v34  ;;  %v341_v48 = vld [vmem:[%s1306_s28 + $0xa0] sm:$0xff]  ;;  %v322_v51 = vld [vmem:[%s1306_s28 + $0x8] sm:$0xff]  ;;  %v383_v54 = vld [vmem:[%s1306_s28 + $0x1f0] sm:$0xff] }
  0x61   : > { %434 = vmatpush1.msra.mxu0 %v342_v25  ;;  %843 = vmatpush3.msra.mxu1 %v350_v36  ;;  %v338_v52 = vld [vmem:[%s1306_s28 + $0x88] sm:$0xff]  ;;  %v321_v53 = vld [vmem:[%s1306_s28] sm:$0xff]  ;;  %v415_v55 = vld [vmem:[%s1306_s28 + $0x2f0] sm:$0xff] }
  0x62   : > { %435 = vmatprep.subr.mxu0 %v340_v27  ;;  %844 = vmatprep.subr.mxu1 %v395_v38  ;;  %v335_v56 = vld [vmem:[%s1306_s28 + $0x70] sm:$0xff]  ;;  %v414_v57 = vld [vmem:[%s1306_s28 + $0x2e8] sm:$0xff]  ;;  %v380_v58 = vld [vmem:[%s1306_s28 + $0x1d8] sm:$0xff] }
  0x63   : > { %436 = vmatpush1.msra.mxu0 %v339_v29  ;;  %845 = vmatpush3.msra.mxu1 %v347_v40  ;;  %v412_v59 = vld [vmem:[%s1306_s28 + $0x2d8] sm:$0xff]  ;;  %v411_v61 = vld [vmem:[%s1306_s28 + $0x2d0] sm:$0xff]  ;;  %v377_v62 = vld [vmem:[%s1306_s28 + $0x1c0] sm:$0xff]  ;;  %v632_v40 = vlaneseq }
  0x64   : > { %437 = vmatprep.subr.mxu0 %v337_v31  ;;  %846 = vmatprep.subr.mxu1 %v392_v42  ;;  %v332_v60 = vld [vmem:[%s1306_s28 + $0x58] sm:$0xff]  ;;  %v409_v63 = vld [vmem:[%s1306_s28 + $0x2c0] sm:$0xff]  ;;  %v374_v2 = vld [vmem:[%s1306_s28 + $0x1a8] sm:$0xff] }
  0x65   : > { %438 = vmatpush1.msra.mxu0 %v336_v33  ;;  %847 = vmatpush3.msra.mxu1 %v344_v44  ;;  %v329_v0 = vld [vmem:[%s1306_s28 + $0x40] sm:$0xff]  ;;  %v408_v1 = vld [vmem:[%s1306_s28 + $0x2b8] sm:$0xff]  ;;  %v406_v3 = vld [vmem:[%s1306_s28 + $0x2a8] sm:$0xff] }
  0x66   : > { %439 = vmatprep.subr.mxu0 %v334_v35  ;;  %848 = vmatprep.subr.mxu1 %v389_v46  ;;  %v326_v4 = vld [vmem:[%s1306_s28 + $0x28] sm:$0xff]  ;;  %v405_v5 = vld [vmem:[%s1306_s28 + $0x2a0] sm:$0xff]  ;;  %v371_v6 = vld [vmem:[%s1306_s28 + $0x190] sm:$0xff] }
  0x67   : > { %440 = vmatpush1.msra.mxu0 %v333_v37  ;;  %849 = vmatpush3.msra.mxu1 %v341_v48  ;;  %v403_v7 = vld [vmem:[%s1306_s28 + $0x290] sm:$0xff]  ;;  %v402_v9 = vld [vmem:[%s1306_s28 + $0x288] sm:$0xff]  ;;  %v400_v11 = vld [vmem:[%s1306_s28 + $0x278] sm:$0xff] }
  0x68   : > { %441 = vmatprep.subr.mxu0 %v331_v39  ;;  %850 = vmatprep.subr.mxu1 %v386_v50  ;;  %v323_v8 = vld [vmem:[%s1306_s28 + $0x10] sm:$0xff]  ;;  %v314_v10 = vld [vmem:[#allocation3 + $0x8] sm:$0xff]  ;;  %v313_v12 = vld [vmem:[#allocation3] sm:$0xff] }
  0x69   : > { %442 = vmatpush1.msra.mxu0 %v330_v41  ;;  %851 = vmatpush3.msra.mxu1 %v338_v52  ;;  %v399_v13 = vld [vmem:[%s1306_s28 + $0x270] sm:$0xff]  ;;  %v397_v14 = vld [vmem:[%s1306_s28 + $0x260] sm:$0xff]  ;;  %v316_v15 = vld [vmem:[#allocation3 + $0x18] sm:$0xff]  ;;  %v633_v41 = vshrl.u32 %v632_v40, 7 }
  0x6a   : > { %443 = vmatprep.subr.mxu0 %v328_v43  ;;  %852 = vmatprep.subr.mxu1 %v383_v54  ;;  %v396_v16 = vld [vmem:[%s1306_s28 + $0x258] sm:$0xff]  ;;  %v394_v17 = vld [vmem:[%s1306_s28 + $0x248] sm:$0xff]  ;;  %v315_v18 = vld [vmem:[#allocation3 + $0x10] sm:$0xff] }
  0x6b   : > { %444 = vmatpush1.msra.mxu0 %v327_v45  ;;  %853 = vmatpush3.msra.mxu1 %v335_v56  ;;  %v393_v19 = vld [vmem:[%s1306_s28 + $0x240] sm:$0xff]  ;;  %v318_v20 = vld [vmem:[#allocation3 + $0x28] sm:$0xff]  ;;  %v391_v21 = vld [vmem:[%s1306_s28 + $0x230] sm:$0xff]  ;;  %v642_v42 = vsub.s32 2, %v633_v41 }
  0x6c   : > { %445 = vmatprep.subr.mxu0 %v325_v47  ;;  %854 = vmatprep.subr.mxu1 %v380_v58  ;;  %v390_v22 = vld [vmem:[%s1306_s28 + $0x228] sm:$0xff]  ;;  %v388_v23 = vld [vmem:[%s1306_s28 + $0x218] sm:$0xff]  ;;  %v317_v24 = vld [vmem:[#allocation3 + $0x20] sm:$0xff] }
  0x6d   : > { %446 = vmatpush1.msra.mxu0 %v324_v49  ;;  %855 = vmatpush3.msra.mxu1 %v332_v60  ;;  %v387_v25 = vld [vmem:[%s1306_s28 + $0x210] sm:$0xff]  ;;  %v320_v26 = vld [vmem:[#allocation3 + $0x38] sm:$0xff]  ;;  %v385_v27 = vld [vmem:[%s1306_s28 + $0x200] sm:$0xff] }
  0x6e   : > { %447 = vmatprep.subr.mxu0 %v322_v51  ;;  %856 = vmatprep.subr.mxu1 %v377_v62  ;;  %v384_v28 = vld [vmem:[%s1306_s28 + $0x1f8] sm:$0xff]  ;;  %v382_v29 = vld [vmem:[%s1306_s28 + $0x1e8] sm:$0xff]  ;;  %v319_v30 = vld [vmem:[#allocation3 + $0x30] sm:$0xff] }
  0x6f   : > { %448 = vmatpush1.msra.mxu0 %v321_v53  ;;  %857 = vmatpush3.msra.mxu1 %v329_v0  ;;  %v381_v31 = vld [vmem:[%s1306_s28 + $0x1e0] sm:$0xff]  ;;  %v379_v32 = vld [vmem:[%s1306_s28 + $0x1d0] sm:$0xff]  ;;  %v378_v33 = vld [vmem:[%s1306_s28 + $0x1c8] sm:$0xff] }
  0x70   : > { %449 = vmatprep.subr.mxu0 %v415_v55  ;;  %858 = vmatprep.subr.mxu1 %v374_v2  ;;  %v376_v34 = vld [vmem:[%s1306_s28 + $0x1b8] sm:$0xff]  ;;  %v375_v35 = vld [vmem:[%s1306_s28 + $0x1b0] sm:$0xff]  ;;  %v373_v36 = vld [vmem:[%s1306_s28 + $0x1a0] sm:$0xff] }
  0x71   : > { %450 = vmatpush2.msra.mxu0 %v414_v57  ;;  %859 = vmatpush3.msra.mxu1 %v326_v4  ;;  %v372_v37 = vld [vmem:[%s1306_s28 + $0x198] sm:$0xff]  ;;  %v370_v38 = vld [vmem:[%s1306_s28 + $0x188] sm:$0xff]  ;;  %v369_v39 = vld [vmem:[%s1306_s28 + $0x180] sm:$0xff] }
  0x72   : > { %451 = vmatprep.subr.mxu0 %v412_v59  ;;  %860 = vmatprep.subr.mxu1 %v371_v6  ;;  %v630_v43 = vld [vmem:[%s250_s20] sm:$0x7]  ;;  %v634_v59 = vsub.s32 0, %v633_v41 }
  0x73   : > { %452 = vmatpush2.msra.mxu0 %v411_v61  ;;  %861 = vmatpush3.msra.mxu1 %v323_v8  ;;  %v643_v45 = vrot.slane %v630_v43, %v642_v42  ;;  %v638_v61 = vsub.s32 1, %v633_v41 }
  0x74   : > { %453 = vmatprep.subr.mxu0 %v409_v63  ;;  %570 = vmatprep.mubr.f32.mxu1 %v314_v10  ;;  %v635_v63 = vrot.slane %v630_v43, %v634_v59 }
  0x75   : > { %454 = vmatpush2.msra.mxu0 %v408_v1  ;;  %571 = vmatmul.mubr.f32.vlgmr.msra.gmra.mxu1 %v313_v12  ;;  %v639_v0 = vrot.slane %v630_v43, %v638_v61 }
  0x76   : > { %455 = vmatprep.subr.mxu0 %v406_v3  ;;  %481 = vmatprep.mubr.f32.mxu0 %v314_v10 }
  0x77   : > { %456 = vmatpush2.msra.mxu0 %v405_v5  ;;  %575 = vmatprep.mubr.f32.mxu1 %v316_v15 }
  0x78   : > { %457 = vmatprep.subr.mxu0 %v403_v7 }
  0x79   : > { %458 = vmatpush2.msra.mxu0 %v402_v9  ;;  %576 = vmatmul.mubr.f32.gmra.mxu1 %v315_v18 }
  0x7a   : > { %459 = vmatprep.subr.mxu0 %v400_v11  ;;  %580 = vmatprep.mubr.f32.mxu1 %v318_v20 }
  0x7b   : > { %460 = vmatpush2.msra.mxu0 %v399_v13 }
  0x7c   : > { %461 = vmatprep.subr.mxu0 %v397_v14 }
  0x7d   : > { %462 = vmatpush2.msra.mxu0 %v396_v16  ;;  %581 = vmatmul.mubr.f32.gmra.mxu1 %v317_v24 }
  0x7e   : > { %463 = vmatprep.subr.mxu0 %v394_v17  ;;  %585 = vmatprep.mubr.f32.mxu1 %v320_v26 }
  0x7f   : > { %464 = vmatpush2.msra.mxu0 %v393_v19 }
  0x80   : > { %465 = vmatprep.subr.mxu0 %v391_v21 }
  0x81   : > { %466 = vmatpush2.msra.mxu0 %v390_v22  ;;  %586 = vmatmul.mubr.f32.gmra.mxu1 %v319_v30 }
  0x82   : > { %467 = vmatprep.subr.mxu0 %v388_v23 }
  0x83   : > { %468 = vmatpush2.msra.mxu0 %v387_v25 }
  0x84   : > { %469 = vmatprep.subr.mxu0 %v385_v27 }
  0x85   : > { %470 = vmatpush2.msra.mxu0 %v384_v28 }
  0x86   : > { %471 = vmatprep.subr.mxu0 %v382_v29 }
  0x87   : > { %472 = vmatpush2.msra.mxu0 %v381_v31 }
  0x88   : > { %473 = vmatprep.subr.mxu0 %v379_v32 }
  0x89   : > { %474 = vmatpush2.msra.mxu0 %v378_v33 }
  0x8a   : > { %475 = vmatprep.subr.mxu0 %v376_v34 }
  0x8b   : > { %476 = vmatpush2.msra.mxu0 %v375_v35 }
  0x8c   : > { %477 = vmatprep.subr.mxu0 %v373_v36 }
  0x8d   : > { %478 = vmatpush2.msra.mxu0 %v372_v37 }
  0x8e   : > { %479 = vmatprep.subr.mxu0 %v370_v38 }
  0x8f   : > { %480 = vmatpush2.msra.mxu0 %v369_v39 }
  0x90   : > { %482 = vmatmul.mubr.f32.vlgmr.msra.gmra.mxu0 %v313_v12 }
  0x91   : > { %487 = vmatprep.mubr.f32.mxu0 %v316_v15 }
  0x94   : > { %488 = vmatmul.mubr.f32.gmra.mxu0 %v315_v18 }
  0x95   : > { %493 = vmatprep.mubr.f32.mxu0 %v318_v20 }
  0x98   : > { %494 = vmatmul.mubr.f32.gmra.mxu0 %v317_v24 }
  0x99   : > { %499 = vmatprep.mubr.f32.mxu0 %v320_v26 }
  0x9c   : > { %500 = vmatmul.mubr.f32.gmra.mxu0 %v319_v30 }
 0x135   : > { %v862_v44 = vpop.f32.mrf.mxu1 }
 0x137   : > { %v863_v46 = vpop.f32.mrf.mxu1 }
 0x138   : > { %v864_v47 = vadd.f32 %v863_v46, %v862_v44 }
 0x139   : > { %v865_v48 = vpop.f32.mrf.mxu1 }
 0x13a   : > { %v649_v49 = vadd.f32 %v864_v47, %v643_v45 }
 0x13b   : > { %v866_v50 = vpop.f32.mrf.mxu1 }
 0x13c   : > { %661 = vst [vmem:[%s1410_s27 + $0x10] sm:$0xff] %v649_v49  ;;  %v867_v51 = vadd.f32 %v866_v50, %v865_v48 }
 0x13d   : > { %v868_v52 = vpop.f32.mrf.mxu1 }
 0x13e   : > { %v652_v53 = vadd.f32 %v867_v51, %v643_v45 }
 0x13f   : > { %v869_v54 = vpop.f32.mrf.mxu1 }
 0x140   : > { %664 = vst [vmem:[%s1410_s27 + $0x28] sm:$0xff] %v652_v53  ;;  %v870_v55 = vadd.f32 %v869_v54, %v868_v52 }
 0x141   : > { %v871_v56 = vpop.f32.mrf.mxu1 }
 0x142   : > { %v655_v57 = vadd.f32 %v870_v55, %v643_v45 }
 0x143   : > { %v872_v58 = vpop.f32.mrf.mxu1 }
 0x144   : > { %667 = vst [vmem:[%s1410_s27 + $0x40] sm:$0xff] %v655_v57  ;;  %v873_v60 = vadd.f32 %v872_v58, %v871_v56 }
 0x146   : > { %v658_v62 = vadd.f32 %v873_v60, %v643_v45 }
 0x148   : > { %670 = vst [vmem:[%s1410_s27 + $0x58] sm:$0xff] %v658_v62 }
 0x150   : > { %v483_v1 = vpop.f32.mrf.mxu0 }
 0x151   : > { %v647_v2 = vadd.f32 %v635_v63, %v483_v1 }
 0x152   : > { %v485_v3 = vpop.f32.mrf.mxu0 }
 0x153   : > { %659 = vst [vmem:[%s1410_s27] sm:$0xff] %v647_v2  ;;  %v648_v4 = vadd.f32 %v639_v0, %v485_v3 }
 0x154   : > { %v489_v5 = vpop.f32.mrf.mxu0 }
 0x155   : > { %660 = vst [vmem:[%s1410_s27 + $0x8] sm:$0xff] %v648_v4  ;;  %v650_v6 = vadd.f32 %v635_v63, %v489_v5 }
 0x156   : > { %v491_v7 = vpop.f32.mrf.mxu0 }
 0x157   : > { %662 = vst [vmem:[%s1410_s27 + $0x18] sm:$0xff] %v650_v6  ;;  %v651_v8 = vadd.f32 %v639_v0, %v491_v7 }
 0x158   : > { %v495_v9 = vpop.f32.mrf.mxu0 }
 0x159   : > { %663 = vst [vmem:[%s1410_s27 + $0x20] sm:$0xff] %v651_v8  ;;  %v653_v10 = vadd.f32 %v635_v63, %v495_v9 }
 0x15a   : > { %v497_v11 = vpop.f32.mrf.mxu0 }
 0x15b   : > { %665 = vst [vmem:[%s1410_s27 + $0x30] sm:$0xff] %v653_v10  ;;  %v654_v12 = vadd.f32 %v639_v0, %v497_v11 }
 0x15c   : > { %v501_v13 = vpop.f32.mrf.mxu0 }
 0x15d   : > { %666 = vst [vmem:[%s1410_s27 + $0x38] sm:$0xff] %v654_v12  ;;  %v656_v14 = vadd.f32 %v635_v63, %v501_v13 }
 0x15e   : > { %v503_v15 = vpop.f32.mrf.mxu0 }
 0x15f   : > { %668 = vst [vmem:[%s1410_s27 + $0x48] sm:$0xff] %v656_v14  ;;  %v657_v16 = vadd.f32 %v639_v0, %v503_v15 }
 0x161   : > { %669 = vst [vmem:[%s1410_s27 + $0x50] sm:$0xff] %v657_v16 }
 0x162   : > { %1060 = shalt.err (!%p1057_p6)
}
 0x163   : > { %s1061_s29 = scalar_lea.hbm %s1427_s8, 1536  ;;  %s1065_s5 = scalar_lea.hbm %s1482_s3, 3072 }
 0x164   : > { %p1062_p8 = scmp.ne.s32.totalorder %s1427_s8, %s1061_s29  ;;  %p1066_p11 = scmp.lt.s32.totalorder %s1427_s8, %s1482_s3 }
 0x165   : > { %p1067_p12 = scmp.lt.s32.totalorder %s1065_s5, %s1061_s29 }
 0x166   : > { %p1063_p5 = pnand %p1062_p8, %p1495_p10 }
 0x167   : > { %p1068_p13 = por %p1067_p12, %p1066_p11 }
 0x168   : > { %p1064_p9 = pneg %p1063_p5 }
 0x16a   : > { %p1069_p7 = pnand %p1068_p13, %p1064_p9 }
 0x16c   : > { %1072 = shalt.err (!%p1069_p7)
}
 0x16d   : > { %s1142_s27 = smov 384   ;;  %s1143_s10 = smov 768  }
 0x16e   : > { %s1144_s6 = smov 24  }
 0x16f   : > { %887 = dma.vmem_to_hbm [thread:$0]  (%p1495_p10), %s1429_s19, 1536, %s1427_s8, %s672_s15, %s1142_s27, %s1143_s10, %s1144_s6  }
 0x170 PF: > { %s703_s4 = sand.u32 1, %s1111_s12   ;;  %p1496_p2 = scmp.ne.s32.totalorder %s1489_s26, 0 }
 0x171   : > { %p1497_p1 = scmp.ge.s32.totalorder %s1131_s17, 2  ;;  %s704_s9 = scalar_lea.sflag [#allocation5], %s703_s4 }
 0x173   : > { %p901_p0 = pnand %p1497_p1, %p1496_p2 }
 0x175   : > { %p902_p3 = pneg %p901_p0 }
 0x177   : > { %1106 = dma.done.wait (%p902_p3), %s704_s9, 1536  }
 0x178   : > { %1108 = vsyncadd (%p902_p3), %s704_s9, 4294965760  ;;  %s20_s17 = sadd.s32 1, %s1131_s17   ;;  %s1498_s12 = smov %s1115_s13 }
 0x179   : > { %p17_p4 = scmp.ge.s32.totalorder %s20_s17, 4   ;;  %s1499_s13 = smov %s1119_s14 }
 0x17a   : > { %s1500_s14 = smov %s1213_s24  ;;  %s1501_s15 = smov %s1127_s16 }
 0x17b   : > { %s1502_s16 = smov %s1504_s18  ;;  %19 = sbr.rel (!%p17_p4) target bundleno = 7 (0x7), region = 102 }
 0x180   :  { %709 = vsyncpa [#allocation4], 1 }
 0x181   :  { %711 = vsyncpa [#allocation4 + $0x1], 1 }
 0x182   :  { %712 = vsyncpa [#allocation7], 1 }
 0x183   :  { %714 = vsyncpa [#allocation7 + $0x1], 1 }
 0x184   :  { %715 = vsyncpa [#allocation5], 1 }
 0x185   :  { %717 = vsyncpa [#allocation5 + $0x1], 1 }

</bundles_post_ra>
